<compile_context>
chip_gen: v6e
topology: v6e:2x2x1
jax: 0.10.0
libtpu: 0.0.40
codegen_flags: <defaults>
</compile_context>

<pallas_src>
import functools

import jax
import jax.numpy as jnp
from jax.experimental import pallas as pl
from jax.experimental.pallas import tpu as pltpu

# ----- synthetic VAE decoder dimensions (small, TPU-tile friendly) -----
B = 8             # batch for the latency-path test
LATENT = 32       # latent dim of z
LATENT_PAD = 128  # zero-padded K so z loads are full-lane
HIDDEN = 128      # hidden width of decoder MLP
C, H, W = 1, 16, 16
OUT = C * H * W   # 256 output logits per sample


def _decoder_kernel(z_ref, w1_ref, b1_ref, w2_ref, b2_ref, o_ref):
    """Fused decode_logits tile: logits = relu(z @ W1 + b1) @ W2 + b2."""
    h = jnp.dot(z_ref[...], w1_ref[...],
                preferred_element_type=jnp.float32)        # MXU: bf16 x bf16 -> f32
    h = jnp.maximum(h + b1_ref[...], 0.0)                  # VPU, f32
    logits = jnp.dot(h.astype(jnp.bfloat16), w2_ref[...],
                     preferred_element_type=jnp.float32)   # MXU
    o_ref[...] = (logits + b2_ref[...]).astype(o_ref.dtype)


def _cost_estimate(batch):
    flops = 2 * batch * (LATENT_PAD * HIDDEN + HIDDEN * OUT)
    bytes_accessed = (
        batch * LATENT_PAD * 2          # z (bf16)
        + LATENT_PAD * HIDDEN * 2       # W1 (bf16)
        + HIDDEN * OUT * 2              # W2 (bf16)
        + (HIDDEN + OUT) * 4            # biases (f32)
        + batch * OUT * 4               # logits (f32)
    )
    return pl.CostEstimate(flops=flops, transcendentals=0,
                           bytes_accessed=bytes_accessed)


def decode_logits_pallas(z_pad, w1, b1, w2, b2, *, block_b=512):
    """z_pad: [B, LATENT_PAD] bf16 -> [B, OUT] f32 logits."""
    bz = z_pad.shape[0]

    if bz <= block_b:
        # Single tile: no grid, no pipeline machinery; everything sits in VMEM
        # for the whole (tiny) kernel.
        return pl.pallas_call(
            _decoder_kernel,
            out_shape=jax.ShapeDtypeStruct((bz, OUT), jnp.float32),
            in_specs=[pl.BlockSpec(memory_space=pltpu.MemorySpace.VMEM)] * 5,
            out_specs=pl.BlockSpec(memory_space=pltpu.MemorySpace.VMEM),
            cost_estimate=_cost_estimate(bz),
        )(z_pad, w1, b1, w2, b2)

    # Batched throughput path: grid over batch tiles. Weights/biases keep
    # block index (0, 0) so they are DMA'd once and stay resident in VMEM
    # across the grid; "parallel" lets Mosaic shard the batch axis across
    # v7x's two TensorCores (no-op on v5e/v6e).
    n_tiles = pl.cdiv(bz, block_b)
    b_padded = n_tiles * block_b
    if b_padded != bz:
        z_pad = jnp.pad(z_pad, ((0, b_padded - bz), (0, 0)))
    out = pl.pallas_call(
        _decoder_kernel,
        out_shape=jax.ShapeDtypeStruct((b_padded, OUT), jnp.float32),
        grid=(n_tiles,),
        in_specs=[
            pl.BlockSpec((block_b, LATENT_PAD), lambda i: (i, 0)),
            pl.BlockSpec((LATENT_PAD, HIDDEN), lambda i: (0, 0)),
            pl.BlockSpec((1, HIDDEN), lambda i: (0, 0)),
            pl.BlockSpec((HIDDEN, OUT), lambda i: (0, 0)),
            pl.BlockSpec((1, OUT), lambda i: (0, 0)),
        ],
        out_specs=pl.BlockSpec((block_b, OUT), lambda i: (i, 0)),
        compiler_params=pltpu.CompilerParams(
            dimension_semantics=("parallel",)),
        cost_estimate=_cost_estimate(b_padded),
    )(z_pad, w1, b1, w2, b2)
    return out[:bz]


@functools.partial(jax.jit, static_argnames=("block_b",))
def _decode_logits(z, w1p, b1, w2, b2, block_b):
    bz = z.shape[0]
    # Zero-pad latent dim to 128 lanes and cast the matmul operand to bf16.
    z_pad = jnp.zeros((bz, LATENT_PAD), jnp.bfloat16).at[:, :LATENT].set(
        z.astype(jnp.bfloat16))
    return decode_logits_pallas(z_pad, w1p, b1, w2, b2, block_b=block_b)


class LESModelWrapperPallas:
    """JAX/Pallas port of LESModelWrapper: exposes .decoder(z) -> decode_logits."""

    def __init__(self, params, *, block_b=512):
        w1, b1, w2, b2 = params
        # Prepare weights once: zero-pad W1's K dim (LATENT -> LATENT_PAD) and
        # cast MXU operands to bf16; biases stay f32 for the VPU adds.
        w1p = jnp.zeros((LATENT_PAD, HIDDEN), jnp.float32).at[:LATENT].set(w1)
        self._w1 = w1p.astype(jnp.bfloat16)
        self._w2 = w2.astype(jnp.bfloat16)
        self._b1 = b1.astype(jnp.float32).reshape(1, HIDDEN)
        self._b2 = b2.astype(jnp.float32).reshape(1, OUT)
        self._block_b = block_b

    def decoder(self, z):
        flat = _decode_logits(z, self._w1, self._b1, self._w2, self._b2,
                              block_b=self._block_b)        # [B, C*H*W]
        return flat.reshape(z.shape[0], C, H, W)             # NCHW logits


def init_params(key):
    k1, k2, k3, k4 = jax.random.split(key, 4)
    w1 = jax.random.normal(k1, (LATENT, HIDDEN), jnp.float32) * 0.05
    b1 = jax.random.normal(k2, (1, HIDDEN), jnp.float32) * 0.01
    w2 = jax.random.normal(k3, (HIDDEN, OUT), jnp.float32) * 0.05
    b2 = jax.random.normal(k4, (1, OUT), jnp.float32) * 0.01
    return w1, b1, w2, b2


def _reference(z, params):
    w1, b1, w2, b2 = params
    h = jnp.maximum(z @ w1 + b1.reshape(1, -1), 0.0)
    return (h @ w2 + b2.reshape(1, -1)).reshape(z.shape[0], C, H, W)


if __name__ == "__main__":
    key = jax.random.PRNGKey(0)
    pkey, zkey, zkey2 = jax.random.split(key, 3)
    params = init_params(pkey)

    # ---- small / latency path (no grid, full-array VMEM blocks) ----
    model = LESModelWrapperPallas(params)
    z = jax.random.normal(zkey, (B, LATENT), jnp.float32)
    logits = model.decoder(z)
    jax.block_until_ready(logits)

    ref = _reference(z, params)
    assert logits.shape == (B, C, H, W)
    assert jnp.allclose(logits, ref, atol=3e-2, rtol=3e-2), float(
        jnp.max(jnp.abs(logits - ref)))

    # ---- batched / throughput path (grid over batch tiles, weights resident) ----
    BB = 256
    zb = jax.random.normal(zkey2, (BB, LATENT), jnp.float32)
    model_b = LESModelWrapperPallas(params, block_b=128)
    logits_b = model_b.decoder(zb)
    jax.block_until_ready(logits_b)

    ref_b = _reference(zb, params)
    assert logits_b.shape == (BB, C, H, W)
    assert jnp.allclose(logits_b, ref_b, atol=3e-2, rtol=3e-2), float(
        jnp.max(jnp.abs(logits_b - ref_b)))

    print("KERNEL_OK")
</pallas_src>

<mosaic_0001>
module attributes {stable_mosaic.version = 11 : i64} {
  func.func @_decoder_kernel(%arg0: memref<8x128xbf16, #tpu.memory_space<vmem>>, %arg1: memref<128x128xbf16, #tpu.memory_space<vmem>>, %arg2: memref<1x128xf32, #tpu.memory_space<vmem>>, %arg3: memref<128x256xbf16, #tpu.memory_space<vmem>>, %arg4: memref<1x256xf32, #tpu.memory_space<vmem>>, %arg5: memref<8x256xf32, #tpu.memory_space<vmem>>) attributes {dimension_semantics = [], scalar_prefetch = 0 : i64, scratch_operands = 0 : i64, tpu.core_type = #tpu.core_type<tc>} {
    %c0 = arith.constant 0 : index
    %c0_0 = arith.constant 0 : index
    %0 = vector.load %arg0[%c0, %c0_0] : memref<8x128xbf16, #tpu.memory_space<vmem>>, vector<8x128xbf16>
    %c0_1 = arith.constant 0 : index
    %c0_2 = arith.constant 0 : index
    %1 = vector.load %arg1[%c0_1, %c0_2] : memref<128x128xbf16, #tpu.memory_space<vmem>>, vector<128x128xbf16>
    %cst = arith.constant dense<0.000000e+00> : vector<8x128xf32>
    %2 = tpu.matmul %0, %1, %cst {dimension_numbers = #tpu.dot_dimension_numbers<[1], [0], [0], [1], [0, 0, 1, 1], [], []>} : vector<8x128xbf16>, vector<128x128xbf16>, vector<8x128xf32> -> vector<8x128xf32>
    %c0_3 = arith.constant 0 : index
    %c0_4 = arith.constant 0 : index
    %3 = vector.load %arg2[%c0_3, %c0_4] : memref<1x128xf32, #tpu.memory_space<vmem>>, vector<1x128xf32>
    %4 = vector.broadcast %3 : vector<1x128xf32> to vector<8x128xf32>
    %5 = arith.addf %2, %4 : vector<8x128xf32>
    %cst_5 = arith.constant 0.000000e+00 : f32
    %6 = vector.broadcast %cst_5 : f32 to vector<8x128xf32>
    %7 = arith.maximumf %5, %6 : vector<8x128xf32>
    %8 = arith.truncf %7 : vector<8x128xf32> to vector<8x128xbf16>
    %c0_6 = arith.constant 0 : index
    %c0_7 = arith.constant 0 : index
    %9 = vector.load %arg3[%c0_6, %c0_7] : memref<128x256xbf16, #tpu.memory_space<vmem>>, vector<128x256xbf16>
    %cst_8 = arith.constant dense<0.000000e+00> : vector<8x256xf32>
    %10 = tpu.matmul %8, %9, %cst_8 {dimension_numbers = #tpu.dot_dimension_numbers<[1], [0], [0], [1], [0, 0, 1, 1], [], []>} : vector<8x128xbf16>, vector<128x256xbf16>, vector<8x256xf32> -> vector<8x256xf32>
    %c0_9 = arith.constant 0 : index
    %c0_10 = arith.constant 0 : index
    %11 = vector.load %arg4[%c0_9, %c0_10] : memref<1x256xf32, #tpu.memory_space<vmem>>, vector<1x256xf32>
    %12 = vector.broadcast %11 : vector<1x256xf32> to vector<8x256xf32>
    %13 = arith.addf %10, %12 : vector<8x256xf32>
    %c0_11 = arith.constant 0 : index
    %c0_12 = arith.constant 0 : index
    %14 = vector.load %arg5[%c0_11, %c0_12] : memref<8x256xf32, #tpu.memory_space<vmem>>, vector<8x256xf32>
    tpu.vector_store %arg5[%c0_11, %c0_12], %13 {strides = array<i32>} : memref<8x256xf32, #tpu.memory_space<vmem>>, vector<8x256xf32>,
    return
  }
}

</mosaic_0001>

<bundles_post_ra>
// kernel: _decode_logits.1
= control target key start
LH: loop header
LB: loop body
LE: loop exit
PB: predicated region body
PF: predicated region fallthrough
CT: control target
= control target key end

     0   :  { %10 = vsyncpa [#allocation3], 0  ;;  %s551_s0 = inlined_call_operand.vmem [shape: bf16[8,128], index: 0, kind: input, shape index: {}]   ;;  %s552_s1 = inlined_call_operand.hbm [shape: bf16[128,128], index: 1, kind: input, shape index: {}]   ;;  %s553_s2 = inlined_call_operand.vmem [shape: f32[1,128], index: 2, kind: input, shape index: {}]   ;;  %s554_s3 = inlined_call_operand.hbm [shape: bf16[128,256], index: 3, kind: input, shape index: {}]   ;;  %s555_s4 = inlined_call_operand.vmem [shape: f32[1,256], index: 4, kind: input, shape index: {}]   ;;  %s556_s5 = inlined_call_operand.hbm [shape: f32[8,256], index: 5, kind: output, shape index: {}]  }
   0x1   :  { %11 = vsyncpa [#allocation6], 0 }
   0x2   :  { %12 = vsyncpa [#allocation4], 0  ;;  %s493_s18 = smov [#allocation2]  }
   0x3   :  { %s20_s19 = sshll.u32 %s493_s18, 4  ;;  %s21_s19 = int_to_ptr.vmem [resolvable:$true] %s20_s19 }
   0x4   :  { %s435_s20 = scalar_lea.vmem %s21_s19, 1024  ;;  %p440_p1 = scmp.lt.s32.totalorder %s21_s19, %s21_s19 }
   0x5   :  { %p436_p0 = scmp.ne.s32.totalorder %s21_s19, %s435_s20  ;;  %p441_p2 = scmp.lt.s32.totalorder %s435_s20, %s435_s20 }
   0x7   :  { %p442_p3 = por %p441_p2, %p440_p1 }
   0x9   :  { %p443_p4 = pnand %p442_p3, %p436_p0 }
   0xb   :  { %446 = shalt.err (!%p443_p4)
}
   0xc   :  { %s494_s21 = smov 64   ;;  %s495_s22 = smov 4  }
   0xd   :  { %26 = dma.hbm_to_vmem [thread:$0]  %s552_s1, 1024, %s21_s19, [#allocation3], %s494_s21, %s494_s21, %s495_s22  }
   0xe   :  { %s496_s25 = smov [#allocation5]  }
   0xf   :  { %s34_s26 = sshll.u32 %s496_s25, 4  ;;  %s35_s26 = int_to_ptr.vmem [resolvable:$true] %s34_s26 }
  0x10   :  { %s455_s27 = scalar_lea.vmem %s35_s26, 2048  ;;  %p460_p6 = scmp.lt.s32.totalorder %s35_s26, %s35_s26 }
  0x11   :  { %p456_p5 = scmp.ne.s32.totalorder %s35_s26, %s455_s27  ;;  %p461_p7 = scmp.lt.s32.totalorder %s455_s27, %s455_s27 }
  0x13   :  { %p462_p8 = por %p461_p7, %p460_p6 }
  0x15   :  { %p463_p9 = pnand %p462_p8, %p456_p5 }
  0x17   :  { %466 = shalt.err (!%p463_p9)
}
  0x18   :  { %s497_s28 = smov 128   ;;  %s498_s29 = smov 8  }
  0x19   :  { %40 = dma.hbm_to_vmem [thread:$0]  %s554_s3, 2048, %s35_s26, [#allocation6], %s497_s28, %s497_s28, %s498_s29  }
  0x1a   :  { %487 = dma.done.wait [#allocation3], 1024  }
  0x1b   :  { %488 = vsyncadd [#allocation3], 4294966272 }
  0x1c   :  { %489 = dma.done.wait [#allocation6], 2048  }
  0x1d   :  { %490 = vsyncadd [#allocation6], 4294965248  ;;  %v499_v0 = vmov 0.0   ;;  %vm500_vm0 = vmmov 0   ;;  %v395_v1 = vld [vmem:[#allocation2 + $0x38] sm:$0xff]   ;;  %v396_v2 = vld [vmem:[#allocation2 + $0x30] sm:$0xff]   ;;  %v182_v35 = vlaneseq }
  0x1e   :  { %365 = vmatprep.subr.bf16.mxu0 %v499_v0  ;;  %381 = vmatprep.mubr.msk.bf16.mxu0 %vm500_vm0, %v499_v0  ;;  %v397_v3 = vld [vmem:[#allocation2 + $0x28] sm:$0xff]   ;;  %v403_v4 = vld [vmem:[#allocation5 + $0x74] ss:$8 sps:$4 sm:$0xff]   ;;  %v405_v5 = vld [vmem:[#allocation5 + $0x70] ss:$8 sps:$4 sm:$0xff]   ;;  %v501_v26 = vmov 0  }
  0x1f   :  { %366 = vmatpush3.bf16.msra.mxu0 %v395_v1  ;;  %v398_v6 = vld [vmem:[#allocation2 + $0x20] sm:$0xff]   ;;  %272 = vmatprep.subr.bf16.mxu1 %v403_v4  ;;  %v409_v9 = vld [vmem:[#allocation5 + $0x54] ss:$8 sps:$4 sm:$0xff]   ;;  %v411_v11 = vld [vmem:[#allocation5 + $0x50] ss:$8 sps:$4 sm:$0xff]   ;;  %v183_v36 = vshrl.u32 %v182_v35, 7 }
  0x20   :  { %367 = vmatprep.subr.bf16.mxu0 %v499_v0  ;;  %v406_v7 = vld [vmem:[#allocation5 + $0x64] ss:$8 sps:$4 sm:$0xff]   ;;  %273 = vmatpush1.bf16.msra.mxu1 %v405_v5  ;;  %v408_v8 = vld [vmem:[#allocation5 + $0x60] ss:$8 sps:$4 sm:$0xff]   ;;  %v399_v10 = vld [vmem:[#allocation2 + $0x18] sm:$0xff]  }
  0x21   :  { %274 = vmatprep.subr.bf16.mxu1 %v406_v7  ;;  %v412_v12 = vld [vmem:[#allocation5 + $0x44] ss:$8 sps:$4 sm:$0xff]   ;;  %v400_v13 = vld [vmem:[#allocation2 + $0x10] sm:$0xff]   ;;  %v414_v14 = vld [vmem:[#allocation5 + $0x40] ss:$8 sps:$4 sm:$0xff]   ;;  %304 = vmatprep.mubr.bf16.mxu1 %v501_v26  ;;  %v184_v37 = vsub.s32 0, %v183_v36 }
  0x22   :  { %v415_v15 = vld [vmem:[#allocation5 + $0x34] ss:$8 sps:$4 sm:$0xff]   ;;  %v401_v16 = vld [vmem:[#allocation2 + $0x8] sm:$0xff]   ;;  %v417_v17 = vld [vmem:[#allocation5 + $0x30] ss:$8 sps:$4 sm:$0xff]   ;;  %v188_v39 = vsub.s32 1, %v183_v36 }
  0x23   :  { %368 = vmatpush3.bf16.msra.mxu0 %v396_v2  ;;  %v418_v18 = vld [vmem:[#allocation5 + $0x24] ss:$8 sps:$4 sm:$0xff]   ;;  %v420_v20 = vld [vmem:[#allocation5 + $0x20] ss:$8 sps:$4 sm:$0xff]   ;;  %v421_v21 = vld [vmem:[#allocation5 + $0x14] ss:$8 sps:$4 sm:$0xff]  }
  0x24   :  { %369 = vmatprep.subr.bf16.mxu0 %v499_v0  ;;  %275 = vmatpush1.bf16.msra.mxu1 %v408_v8  ;;  %v402_v19 = vld [vmem:[#allocation2] sm:$0xff]   ;;  %v423_v23 = vld [vmem:[#allocation5 + $0x10] ss:$8 sps:$4 sm:$0xff]  }
  0x25   :  { %276 = vmatprep.subr.bf16.mxu1 %v409_v9  ;;  %v50_v22 = vld [vmem:[%s551_s0] sm:$0xf]  ;;  %v424_v24 = vld [vmem:[#allocation5 + $0x4] ss:$8 sps:$4 sm:$0xff]  }
  0x26   :  { %v426_v25 = vld [vmem:[#allocation5] ss:$8 sps:$4 sm:$0xff]  }
  0x27   :  { %370 = vmatpush3.bf16.msra.mxu0 %v397_v3  ;;  %v331_v27 = vld [vmem:[%s553_s2] ss:$0 sm:$0xff]  ;;  %s502_s2 = smov [#allocation7]  }
  0x28   :  { %371 = vmatprep.subr.bf16.mxu0 %v499_v0  ;;  %277 = vmatpush1.bf16.msra.mxu1 %v411_v11  ;;  %v180_v38 = vld [vmem:[%s555_s4] sm:$0x3]  ;;  %s321_s10 = sshll.u32 %s502_s2, 4  ;;  %s322_s10 = int_to_ptr.vmem [resolvable:$true] %s321_s10 }
  0x29   :  { %278 = vmatprep.subr.bf16.mxu1 %v412_v12  ;;  %v185_v40 = vrot.slane %v180_v38, %v184_v37  ;;  %v189_v41 = vrot.slane %v180_v38, %v188_v39  ;;  %s467_s11 = scalar_lea.vmem %s322_s10, 256  ;;  %p472_p11 = scmp.lt.s32.totalorder %s322_s10, %s322_s10 }
  0x2a   :  { %p468_p10 = scmp.ne.s32.totalorder %s322_s10, %s467_s11  ;;  %p473_p12 = scmp.lt.s32.totalorder %s467_s11, %s467_s11 }
  0x2b   :  { %372 = vmatpush3.bf16.msra.mxu0 %v398_v6 }
  0x2c   :  { %373 = vmatprep.subr.bf16.mxu0 %v499_v0  ;;  %279 = vmatpush1.bf16.msra.mxu1 %v414_v14  ;;  %p474_p13 = por %p473_p12, %p472_p11 }
  0x2d   :  { %280 = vmatprep.subr.bf16.mxu1 %v415_v15 }
  0x2e   :  { %p475_p0 = pnand %p474_p13, %p468_p10 }
  0x2f   :  { %374 = vmatpush3.bf16.msra.mxu0 %v399_v10 }
  0x30   :  { %375 = vmatprep.subr.bf16.mxu0 %v499_v0  ;;  %281 = vmatpush1.bf16.msra.mxu1 %v417_v17 }
  0x31   :  { %282 = vmatprep.subr.bf16.mxu1 %v418_v18 }
  0x33   :  { %376 = vmatpush3.bf16.msra.mxu0 %v400_v13 }
  0x34   :  { %377 = vmatprep.subr.bf16.mxu0 %v499_v0  ;;  %283 = vmatpush1.bf16.msra.mxu1 %v420_v20 }
  0x35   :  { %284 = vmatprep.subr.bf16.mxu1 %v421_v21 }
  0x37   :  { %378 = vmatpush3.bf16.msra.mxu0 %v401_v16 }
  0x38   :  { %379 = vmatprep.subr.bf16.mxu0 %v499_v0  ;;  %285 = vmatpush1.bf16.msra.mxu1 %v423_v23 }
  0x39   :  { %286 = vmatprep.subr.bf16.mxu1 %v424_v24 }
  0x3b   :  { %380 = vmatpush3.bf16.msra.mxu0 %v402_v19 }
  0x3c   :  { %287 = vmatpush1.bf16.msra.mxu1 %v426_v25 }
  0x3e   :  { %382 = vmatmul.mubr.bf16.vlgmr.msra.gmra.mxu0 %v50_v22 }
  0xfe   :  { %v156_v28 = vpop.f32.mrf.mxu0 }
  0xff   :  { %v157_v29 = vadd.f32 %v331_v27, %v156_v28 }
 0x100   :  { %v383_v30 = vpop.f32.mrf.mxu0 }
 0x101   :  { %v162_v31 = vmax.f32 %v157_v29, 0.0 }
 0x102   :  { %v159_v32 = vpop.f32.mrf.mxu0 }
 0x103   :  { %v163_v33 = vpack.c.bf16 %v162_v31, %v162_v31 }
 0x104   :  { %v384_v34 = vpop.f32.mrf.mxu0 }
 0x105   :  { %305 = vmatmul.mubr.bf16.vlgmr.msra.gmra.mxu1 %v163_v33 }
 0x1c5   :  { %v306_v42 = vpop.f32.mrf.mxu1 }
 0x1c6   :  { %v307_v43 = vadd.f32 %v306_v42, %v185_v40 }
 0x1c7   :  { %v308_v44 = vpop.f32.mrf.mxu1 }
 0x1c8   :  { %313 = vst [vmem:[#allocation7] sm:$0xff] %v307_v43  ;;  %v309_v45 = vadd.f32 %v308_v44, %v189_v41 }
 0x1c9   :  { %v310_v46 = vpop.f32.mrf.mxu1 }
 0x1ca   :  { %314 = vst [vmem:[#allocation7 + $0x8] sm:$0xff] %v309_v45 }
 0x1cb   :  { %v311_v47 = vpop.f32.mrf.mxu1 }
 0x1cc   :  { %478 = shalt.err (!%p475_p0)
}
 0x1cd   :  { %324 = dma.vmem_to_hbm [thread:$0]  %s322_s10, 256, %s556_s5, [#allocation4]  }
 0x1ce   :  { %491 = dma.done.wait [#allocation4], 256  }
 0x1cf   :  { %492 = vsyncadd [#allocation4], 4294967040 }
 0x1d0   :  { %328 = vsyncpa [#allocation3], 1 }
 0x1d1   :  { %329 = vsyncpa [#allocation6], 1 }
 0x1d2   :  { %330 = vsyncpa [#allocation4], 1 }

</bundles_post_ra>
